<compile_context>
chip_gen: v7x
topology: tpu7x:2x2x1
jax: 0.10.0
libtpu: 0.0.40
codegen_flags: <defaults>
</compile_context>

<pallas_src>
import functools

import jax
import jax.numpy as jnp
from jax import lax
from jax.experimental import pallas as pl
from jax.experimental.pallas import tpu as pltpu


def _query_vmem_limit():
    """Per-generation VMEM budget: ~3/4 of physical, capped at 100 MiB.
    v5e/v6e (128 MiB physical) -> ~96 MiB;  v7x (64 MiB) -> 48 MiB."""
    cap = 64 * 1024 * 1024                      # conservative fallback (v7x)
    try:
        info = pltpu.get_tpu_info()
        cap = int(getattr(info, "vmem_capacity_bytes", cap) or cap)
    except Exception:
        pass
    return min(cap * 3 // 4, 100 * 1024 * 1024)


_VMEM_LIMIT = _query_vmem_limit()


def _pick_tile(dim, preferred, align):
    """Largest divisor of `dim` that is a multiple of `align` and <= preferred.

    Falls back to the full dimension (always a legal block) only when no
    aligned divisor exists; callers budget-check the result so an oversized
    full-dim block fails loudly instead of silently blowing VMEM."""
    t = (min(preferred, dim) // align) * align
    while t >= align:
        if dim % t == 0:
            return t
        t -= align
    return dim


# ----------------------------------------------------------------------------
# Kernel 1: tiled fused linear layer  y = x @ W + b
#   grid = (M/tm, N/tn, K/tk), K innermost ("arbitrary"), f32 accumulator.
#   Operands arrive in bfloat16 (weights stored bf16); bias stays f32.
# ----------------------------------------------------------------------------
def _linear_kernel(x_ref, w_ref, b_ref, o_ref, acc_ref):
    kk = pl.program_id(2)

    @pl.when(kk == 0)
    def _init():
        acc_ref[...] = jnp.zeros_like(acc_ref)

    # Operands already bf16 (no-op cast kept only for robustness with f32 in).
    acc_ref[...] += jnp.dot(
        x_ref[...].astype(jnp.bfloat16),
        w_ref[...].astype(jnp.bfloat16),
        preferred_element_type=jnp.float32,
    )

    @pl.when(kk == pl.num_programs(2) - 1)
    def _finalize():
        o_ref[...] = (acc_ref[...] + b_ref[...].astype(jnp.float32)).astype(o_ref.dtype)


def linear(x2d, w, b, *, out_dtype=None, tm=512, tn=512, tk=1024):
    """x2d: (M, K), w: (K, N), b: (1, N) -> (M, N)."""
    m, k_dim = x2d.shape
    k2, n = w.shape
    assert k_dim == k2 and b.shape == (1, n)
    out_dtype = jnp.dtype(out_dtype if out_dtype is not None else x2d.dtype)

    budget = int(_VMEM_LIMIT * 0.9)
    btm = btn = btk = None
    for shrink in range(6):
        ctm = _pick_tile(m, max(tm >> shrink, 8), 8)
        ctn = _pick_tile(n, max(tn >> shrink, 128), 128)
        ctk = _pick_tile(k_dim, max(tk >> shrink, 128), 128)
        est = (2 * ctm * ctk * x2d.dtype.itemsize        # x (double-buffered)
               + 2 * ctk * ctn * w.dtype.itemsize        # w
               + 2 * ctn * b.dtype.itemsize              # bias
               + 2 * ctm * ctn * out_dtype.itemsize      # out
               + ctm * ctn * 4)                          # f32 accumulator
        btm, btn, btk = ctm, ctn, ctk
        if est <= budget:
            break
    else:
        raise ValueError(
            f"linear: no VMEM-safe tiling for ({m},{k_dim})x({k_dim},{n}); "
            "TODO(synk): cdiv grid with masked edge tiles")

    grid = (m // btm, n // btn, k_dim // btk)

    cost = pl.CostEstimate(
        flops=2 * m * n * k_dim,
        transcendentals=0,
        bytes_accessed=(m * k_dim * x2d.dtype.itemsize
                        + k_dim * n * w.dtype.itemsize
                        + n * b.dtype.itemsize
                        + m * n * out_dtype.itemsize),
    )

    return pl.pallas_call(
        _linear_kernel,
        out_shape=jax.ShapeDtypeStruct((m, n), out_dtype),
        grid_spec=pltpu.PrefetchScalarGridSpec(
            num_scalar_prefetch=0,
            grid=grid,
            in_specs=[
                pl.BlockSpec((btm, btk), lambda i, j, kk: (i, kk)),
                pl.BlockSpec((btk, btn), lambda i, j, kk: (kk, j)),
                pl.BlockSpec((1, btn), lambda i, j, kk: (0, j)),
            ],
            out_specs=pl.BlockSpec((btm, btn), lambda i, j, kk: (i, j)),
            scratch_shapes=[pltpu.VMEM((btm, btn), jnp.float32)],
        ),
        compiler_params=pltpu.CompilerParams(
            dimension_semantics=("parallel", "parallel", "arbitrary"),
            vmem_limit_bytes=_VMEM_LIMIT,
        ),
        cost_estimate=cost,
    )(x2d, w, b)


# ----------------------------------------------------------------------------
# Kernel 2: flash-style scaled-dot-product attention (all heads per block)
#   q/k/v blocks arrive as lane-dense (tile, h*d) slabs, are packed once per
#   grid step into (heads, tile, d), and all score / online-softmax / PV math
#   is head-batched.  bf16 MXU operands, f32 accumulation & softmax stats.
#   1/sqrt(d) is already folded into the Q projection weights.
# ----------------------------------------------------------------------------
def _flash_attn_kernel(q_ref, k_ref, v_ref, o_ref, m_sc, l_sc, acc_sc,
                       *, heads, dim_head):
    ki = pl.program_id(2)

    @pl.when(ki == 0)
    def _init():
        m_sc[...] = jnp.full_like(m_sc, -jnp.inf)
        l_sc[...] = jnp.zeros_like(l_sc)
        acc_sc[...] = jnp.zeros_like(acc_sc)

    def split_heads(slab):
        # (tile, h*d) -> (heads, tile, d): one static lane slice per head,
        # packed once per slab per grid step; everything after is batched.
        return jnp.stack(
            [slab[:, h * dim_head:(h + 1) * dim_head] for h in range(heads)],
            axis=0)

    q = split_heads(q_ref[...])       # (h, TQ,  d)   (Q pre-scaled by 1/sqrt(d))
    k = split_heads(k_ref[...])       # (h, TKV, d)
    v = split_heads(v_ref[...])       # (h, TKV, d)

    # Batched q @ k^T over heads (contract d):  (h, TQ, TKV) f32.
    s = lax.dot_general(q, k, (((2,), (2,)), ((0,), (0,))),
                        preferred_element_type=jnp.float32)

    m_prev = m_sc[...]                                            # (h, TQ, 1)
    m_new = jnp.maximum(m_prev, jnp.max(s, axis=-1, keepdims=True))
    alpha = jnp.exp(m_prev - m_new)                               # f32 (v5e-safe)
    p = jnp.exp(s - m_new)                                        # (h, TQ, TKV) f32

    l_sc[...] = alpha * l_sc[...] + jnp.sum(p, axis=-1, keepdims=True)
    acc_sc[...] = alpha * acc_sc[...] + lax.dot_general(
        p.astype(v.dtype), v, (((2,), (1,)), ((0,), (0,))),
        preferred_element_type=jnp.float32)                       # (h, TQ, d)
    m_sc[...] = m_new

    @pl.when(ki == pl.num_programs(2) - 1)
    def _finalize():
        inv_l = pl.reciprocal(l_sc[...], approx=True)             # EUP vrcp
        o_ref[...] = (acc_sc[...] * inv_l).astype(o_ref.dtype)    # (h, TQ, d)


def flash_attention(qkv3, heads, dim_head, *, tq=256, tkv=256):
    """qkv3: (b, l, 3*h*d) fused projection output -> (b, h, l, d)."""
    b, l, three_hd = qkv3.shape
    hd = heads * dim_head
    assert three_hd == 3 * hd

    btq = _pick_tile(l, tq, 8)
    btkv = _pick_tile(l, tkv, 8)
    grid = (b, l // btq, l // btkv)

    itemsize = qkv3.dtype.itemsize
    est = (2 * (btq + 2 * btkv) * hd * itemsize          # q/k/v double-buffered
           + 2 * heads * btq * dim_head * itemsize       # out
           + heads * btq * (dim_head + 2) * 4            # acc/m/l scratch
           + heads * btq * btkv * 4)                     # scores intermediate
    assert est <= int(_VMEM_LIMIT * 0.9), (
        f"flash_attention tiles (tq={btq}, tkv={btkv}) exceed the VMEM budget; "
        "TODO(synk): cdiv grid with masked edge tiles")

    if hd % 128 == 0:
        # Lane-aligned: read Q/K/V slabs straight out of the fused projection
        # output via the index_map (block index along the last axis selects
        # the q/k/v chunk) -> zero host-side copies.
        q_spec = pl.BlockSpec((None, btq, hd), lambda bi, qi, ki: (bi, qi, 0))
        k_spec = pl.BlockSpec((None, btkv, hd), lambda bi, qi, ki: (bi, ki, 1))
        v_spec = pl.BlockSpec((None, btkv, hd), lambda bi, qi, ki: (bi, ki, 2))
        inputs = (qkv3, qkv3, qkv3)
    else:
        # Zero-copy fallback for h*d not a multiple of 128 lanes: view the
        # fused output as (b, l, 3, hd) (free reshape) and select q/k/v via
        # the squeezed third axis; the block's last dim equals the full array
        # dim, so it stays legal for any hd.  No extra HBM pass.
        qkv4 = qkv3.reshape(b, l, 3, hd)
        q_spec = pl.BlockSpec((None, btq, None, hd), lambda bi, qi, ki: (bi, qi, 0, 0))
        k_spec = pl.BlockSpec((None, btkv, None, hd), lambda bi, qi, ki: (bi, ki, 1, 0))
        v_spec = pl.BlockSpec((None, btkv, None, hd), lambda bi, qi, ki: (bi, ki, 2, 0))
        inputs = (qkv4, qkv4, qkv4)

    # Output keeps (b, heads, l, d) flat order so the host-side reshape
    # reproduces the module's exact ("buggy") head merge for free.
    o_spec = pl.BlockSpec((None, heads, btq, dim_head),
                          lambda bi, qi, ki: (bi, 0, qi, 0))

    kernel = functools.partial(_flash_attn_kernel, heads=heads, dim_head=dim_head)
    cost = pl.CostEstimate(
        flops=4 * b * heads * l * l * dim_head,          # QK^T + PV
        transcendentals=b * heads * l * l,               # exp
        bytes_accessed=(3 * b * l * hd + b * heads * l * dim_head) * itemsize,
    )

    return pl.pallas_call(
        kernel,
        out_shape=jax.ShapeDtypeStruct((b, heads, l, dim_head), qkv3.dtype),
        grid_spec=pltpu.PrefetchScalarGridSpec(
            num_scalar_prefetch=0,
            grid=grid,
            in_specs=[q_spec, k_spec, v_spec],
            out_specs=o_spec,
            scratch_shapes=[
                pltpu.VMEM((heads, btq, 1), jnp.float32),         # running max
                pltpu.VMEM((heads, btq, 1), jnp.float32),         # running sum
                pltpu.VMEM((heads, btq, dim_head), jnp.float32),  # output acc
            ],
        ),
        compiler_params=pltpu.CompilerParams(
            dimension_semantics=("parallel", "parallel", "arbitrary"),
            vmem_limit_bytes=_VMEM_LIMIT,
        ),
        cost_estimate=cost,
    )(*inputs)


# ----------------------------------------------------------------------------
# One-time parameter preparation (hoisted out of the per-call forward):
#   fuse QKV weights, fold the 1/sqrt(dim_head) score scale into Q, store the
#   weights in bfloat16 (biases stay f32 for accuracy; they are tiny).
# ----------------------------------------------------------------------------
def prepare_params(params, dim_head, compute_dtype=jnp.bfloat16):
    scale = 1.0 / (float(dim_head) ** 0.5)
    wqkv = jnp.concatenate(
        [params["wq"] * scale, params["wk"], params["wv"]], axis=1)
    bqkv = jnp.concatenate(
        [params["bq"] * scale, params["bk"], params["bv"]], axis=1)
    return dict(
        wqkv=wqkv.astype(compute_dtype),
        bqkv=bqkv.astype(jnp.float32),
        wo=params["wo"].astype(compute_dtype),
        bo=params["bo"].astype(jnp.float32),
    )


# ----------------------------------------------------------------------------
# Full module forward (glue is plain JAX; matmuls / softmax are Pallas)
# ----------------------------------------------------------------------------
def attention_forward(x, prepared, heads, dim_head, compute_dtype=jnp.bfloat16):
    b, l, in_dim = x.shape
    hd = heads * dim_head

    # Fused QKV projection: one tiled matmul, x streamed from HBM once.
    x2 = x.reshape(b * l, in_dim).astype(compute_dtype)
    qkv = linear(x2, prepared["wqkv"], prepared["bqkv"], out_dtype=compute_dtype)
    qkv = qkv.reshape(b, l, 3 * hd)                            # free reshape

    av = flash_attention(qkv, heads, dim_head)                 # (b, h, l, d)

    # PyTorch merges (b*h, l, d) back with a plain row-major reshape to
    # (b, l, h*d); (b, h, l, d) has identical flat order, so this reshape
    # reproduces the module's exact ("buggy") merge for free.
    av2 = av.reshape(b * l, hd)

    o = linear(av2, prepared["wo"], prepared["bo"], out_dtype=x.dtype)
    # TODO(synk): dropout treated as identity (eval mode).
    return o.reshape(b, l, in_dim)


# ----------------------------------------------------------------------------
# Deterministic parameter init (nn.Linear-style uniform, f32 master copy)
# ----------------------------------------------------------------------------
def init_params(key, in_dim, heads, dim_head, dtype=jnp.float32):
    hd = heads * dim_head
    keys = jax.random.split(key, 8)

    def lin(kw, kb, fan_in, fan_out):
        bound = 1.0 / (fan_in ** 0.5)
        w = jax.random.uniform(kw, (fan_in, fan_out), dtype, -bound, bound)
        b = jax.random.uniform(kb, (1, fan_out), dtype, -bound, bound)
        return w, b

    wq, bq = lin(keys[0], keys[1], in_dim, hd)
    wk, bk = lin(keys[2], keys[3], in_dim, hd)
    wv, bv = lin(keys[4], keys[5], in_dim, hd)
    wo, bo = lin(keys[6], keys[7], hd, in_dim)
    return dict(wq=wq, bq=bq, wk=wk, bk=bk, wv=wv, bv=bv, wo=wo, bo=bo)


# ----------------------------------------------------------------------------
# Pure-JAX f32 reference (reproduces the PyTorch module, incl. buggy merge)
# ----------------------------------------------------------------------------
def attention_reference(x, params, heads, dim_head):
    b, l, in_dim = x.shape
    hd = heads * dim_head
    q = x @ params["wq"] + params["bq"]
    k = x @ params["wk"] + params["bk"]
    v = x @ params["wv"] + params["bv"]

    def split(t):
        return (t.reshape(b, l, heads, dim_head)
                 .transpose(0, 2, 1, 3)
                 .reshape(b * heads, l, dim_head))

    qh, kh, vh = split(q), split(k), split(v)
    s = jnp.einsum("bld,bmd->blm", qh, kh) / (dim_head ** 0.5)
    p = jax.nn.softmax(s, axis=-1)
    av = jnp.einsum("blm,bmd->bld", p, vh).reshape(b, l, hd)   # buggy merge
    return av @ params["wo"] + params["bo"]


if __name__ == "__main__":
    batch, seq, in_dim = 2, 8, 32
    heads, dim_head = 4, 32          # h*d = 128 -> lane-aligned fused-QKV path

    key = jax.random.PRNGKey(0)
    kx, kp = jax.random.split(key)
    x = jax.random.normal(kx, (batch, seq, in_dim), dtype=jnp.float32)
    params = init_params(kp, in_dim, heads, dim_head)

    # One-time weight prep (fusion + scale-folding + bf16 cast), outside the
    # per-call forward.
    prepared = prepare_params(params, dim_head)

    fwd = jax.jit(attention_forward, static_argnums=(2, 3))
    out = jax.block_until_ready(fwd(x, prepared, heads, dim_head))

    ref = attention_reference(x, params, heads, dim_head)
    assert out.shape == (batch, seq, in_dim)
    max_err = float(jnp.max(jnp.abs(out - ref)))
    # Loose tolerance: weights/activations and MXU operands are bfloat16 and
    # the softmax denominator uses the approximate EUP reciprocal.
    assert max_err < 5e-2, f"mismatch vs reference: max abs err {max_err}"

    print("KERNEL_OK")
</pallas_src>

<mosaic_0001>
module attributes {stable_mosaic.version = 11 : i64} {
  func.func @_flash_attn_kernel(%arg0: i32, %arg1: i32, %arg2: i32, %arg3: memref<1x8x128xbf16, #tpu.memory_space<vmem>>, %arg4: memref<1x8x128xbf16, #tpu.memory_space<vmem>>, %arg5: memref<1x8x128xbf16, #tpu.memory_space<vmem>>, %arg6: memref<1x4x8x32xbf16, #tpu.memory_space<vmem>>, %arg7: memref<4x8x1xf32, #tpu.memory_space<vmem>>, %arg8: memref<4x8x1xf32, #tpu.memory_space<vmem>>, %arg9: memref<4x8x32xf32, #tpu.memory_space<vmem>>) attributes {dimension_semantics = [#tpu.dimension_semantics<parallel>, #tpu.dimension_semantics<parallel>, #tpu.dimension_semantics<arbitrary>], iteration_bounds = array<i64: 2, 1, 1>, scalar_prefetch = 0 : i64, scratch_operands = 3 : i64, tpu.core_type = #tpu.core_type<tc>, window_params = [{transform_indices = @transform_0, window_bounds = array<i64: 1, 8, 128>}, {transform_indices = @transform_1, window_bounds = array<i64: 1, 8, 128>}, {transform_indices = @transform_2, window_bounds = array<i64: 1, 8, 128>}, {transform_indices = @transform_3, window_bounds = array<i64: 1, 4, 8, 32>}]} {
    %c0_i32 = arith.constant 0 : i32
    %0 = arith.cmpi eq, %arg2, %c0_i32 : i32
    %1 = arith.extui %0 : i1 to i32
    %c0_i32_0 = arith.constant 0 : i32
    %2 = arith.cmpi ne, %1, %c0_i32_0 : i32
    scf.if %2 {
      %cst_32 = arith.constant 0xFF800000 : f32
      %63 = vector.broadcast %cst_32 : f32 to vector<4x8x1xf32>
      %c0_33 = arith.constant 0 : index
      %c0_34 = arith.constant 0 : index
      %c0_35 = arith.constant 0 : index
      %64 = vector.load %arg7[%c0_33, %c0_34, %c0_35] : memref<4x8x1xf32, #tpu.memory_space<vmem>>, vector<4x8x1xf32>
      tpu.vector_store %arg7[%c0_33, %c0_34, %c0_35], %63 {strides = array<i32>} : memref<4x8x1xf32, #tpu.memory_space<vmem>>, vector<4x8x1xf32>,
      %cst_36 = arith.constant 0.000000e+00 : f32
      %65 = vector.broadcast %cst_36 : f32 to vector<4x8x1xf32>
      %c0_37 = arith.constant 0 : index
      %c0_38 = arith.constant 0 : index
      %c0_39 = arith.constant 0 : index
      %66 = vector.load %arg8[%c0_37, %c0_38, %c0_39] : memref<4x8x1xf32, #tpu.memory_space<vmem>>, vector<4x8x1xf32>
      tpu.vector_store %arg8[%c0_37, %c0_38, %c0_39], %65 {strides = array<i32>} : memref<4x8x1xf32, #tpu.memory_space<vmem>>, vector<4x8x1xf32>,
      %cst_40 = arith.constant 0.000000e+00 : f32
      %67 = vector.broadcast %cst_40 : f32 to vector<4x8x32xf32>
      %c0_41 = arith.constant 0 : index
      %c0_42 = arith.constant 0 : index
      %c0_43 = arith.constant 0 : index
      %68 = vector.load %arg9[%c0_41, %c0_42, %c0_43] : memref<4x8x32xf32, #tpu.memory_space<vmem>>, vector<4x8x32xf32>
      tpu.vector_store %arg9[%c0_41, %c0_42, %c0_43], %67 {strides = array<i32>} : memref<4x8x32xf32, #tpu.memory_space<vmem>>, vector<4x8x32xf32>,
    } else {
    }
    %c0 = arith.constant 0 : index
    %c0_1 = arith.constant 0 : index
    %c0_2 = arith.constant 0 : index
    %3 = vector.load %arg3[%c0, %c0_1, %c0_2] : memref<1x8x128xbf16, #tpu.memory_space<vmem>>, vector<1x8x128xbf16>
    %4 = vector.shape_cast %3 : vector<1x8x128xbf16> to vector<8x128xbf16>
    %5 = vector.extract_strided_slice %4 {offsets = [0, 0], sizes = [8, 32], strides = [1, 1]} : vector<8x128xbf16> to vector<8x32xbf16>
    %6 = vector.extract_strided_slice %4 {offsets = [0, 32], sizes = [8, 32], strides = [1, 1]} : vector<8x128xbf16> to vector<8x32xbf16>
    %7 = vector.extract_strided_slice %4 {offsets = [0, 64], sizes = [8, 32], strides = [1, 1]} : vector<8x128xbf16> to vector<8x32xbf16>
    %8 = vector.extract_strided_slice %4 {offsets = [0, 96], sizes = [8, 32], strides = [1, 1]} : vector<8x128xbf16> to vector<8x32xbf16>
    %9 = vector.shape_cast %5 : vector<8x32xbf16> to vector<1x8x32xbf16>
    %10 = vector.shape_cast %6 : vector<8x32xbf16> to vector<1x8x32xbf16>
    %11 = vector.shape_cast %7 : vector<8x32xbf16> to vector<1x8x32xbf16>
    %12 = vector.shape_cast %8 : vector<8x32xbf16> to vector<1x8x32xbf16>
    %13 = tpu.concatenate %9, %10, %11, %12 in 0 : vector<1x8x32xbf16>, vector<1x8x32xbf16>, vector<1x8x32xbf16>, vector<1x8x32xbf16> -> vector<4x8x32xbf16>
    %c0_3 = arith.constant 0 : index
    %c0_4 = arith.constant 0 : index
    %c0_5 = arith.constant 0 : index
    %14 = vector.load %arg4[%c0_3, %c0_4, %c0_5] : memref<1x8x128xbf16, #tpu.memory_space<vmem>>, vector<1x8x128xbf16>
    %15 = vector.shape_cast %14 : vector<1x8x128xbf16> to vector<8x128xbf16>
    %16 = vector.extract_strided_slice %15 {offsets = [0, 0], sizes = [8, 32], strides = [1, 1]} : vector<8x128xbf16> to vector<8x32xbf16>
    %17 = vector.extract_strided_slice %15 {offsets = [0, 32], sizes = [8, 32], strides = [1, 1]} : vector<8x128xbf16> to vector<8x32xbf16>
    %18 = vector.extract_strided_slice %15 {offsets = [0, 64], sizes = [8, 32], strides = [1, 1]} : vector<8x128xbf16> to vector<8x32xbf16>
    %19 = vector.extract_strided_slice %15 {offsets = [0, 96], sizes = [8, 32], strides = [1, 1]} : vector<8x128xbf16> to vector<8x32xbf16>
    %20 = vector.shape_cast %16 : vector<8x32xbf16> to vector<1x8x32xbf16>
    %21 = vector.shape_cast %17 : vector<8x32xbf16> to vector<1x8x32xbf16>
    %22 = vector.shape_cast %18 : vector<8x32xbf16> to vector<1x8x32xbf16>
    %23 = vector.shape_cast %19 : vector<8x32xbf16> to vector<1x8x32xbf16>
    %24 = tpu.concatenate %20, %21, %22, %23 in 0 : vector<1x8x32xbf16>, vector<1x8x32xbf16>, vector<1x8x32xbf16>, vector<1x8x32xbf16> -> vector<4x8x32xbf16>
    %c0_6 = arith.constant 0 : index
    %c0_7 = arith.constant 0 : index
    %c0_8 = arith.constant 0 : index
    %25 = vector.load %arg5[%c0_6, %c0_7, %c0_8] : memref<1x8x128xbf16, #tpu.memory_space<vmem>>, vector<1x8x128xbf16>
    %26 = vector.shape_cast %25 : vector<1x8x128xbf16> to vector<8x128xbf16>
    %27 = vector.extract_strided_slice %26 {offsets = [0, 0], sizes = [8, 32], strides = [1, 1]} : vector<8x128xbf16> to vector<8x32xbf16>
    %28 = vector.extract_strided_slice %26 {offsets = [0, 32], sizes = [8, 32], strides = [1, 1]} : vector<8x128xbf16> to vector<8x32xbf16>
    %29 = vector.extract_strided_slice %26 {offsets = [0, 64], sizes = [8, 32], strides = [1, 1]} : vector<8x128xbf16> to vector<8x32xbf16>
    %30 = vector.extract_strided_slice %26 {offsets = [0, 96], sizes = [8, 32], strides = [1, 1]} : vector<8x128xbf16> to vector<8x32xbf16>
    %31 = vector.shape_cast %27 : vector<8x32xbf16> to vector<1x8x32xbf16>
    %32 = vector.shape_cast %28 : vector<8x32xbf16> to vector<1x8x32xbf16>
    %33 = vector.shape_cast %29 : vector<8x32xbf16> to vector<1x8x32xbf16>
    %34 = vector.shape_cast %30 : vector<8x32xbf16> to vector<1x8x32xbf16>
    %35 = tpu.concatenate %31, %32, %33, %34 in 0 : vector<1x8x32xbf16>, vector<1x8x32xbf16>, vector<1x8x32xbf16>, vector<1x8x32xbf16> -> vector<4x8x32xbf16>
    %cst = arith.constant dense<0.000000e+00> : vector<4x8x8xf32>
    %36 = tpu.matmul %13, %24, %cst {dimension_numbers = #tpu.dot_dimension_numbers<[2], [2], [1], [1], [0, 0, 0, 1, 1, 1], [0], [0]>} : vector<4x8x32xbf16>, vector<4x8x32xbf16>, vector<4x8x8xf32> -> vector<4x8x8xf32>
    %c0_9 = arith.constant 0 : index
    %c0_10 = arith.constant 0 : index
    %c0_11 = arith.constant 0 : index
    %37 = vector.load %arg7[%c0_9, %c0_10, %c0_11] : memref<4x8x1xf32, #tpu.memory_space<vmem>>, vector<4x8x1xf32>
    %cst_12 = arith.constant dense<0xFF800000> : vector<4x8xf32>
    %38 = vector.multi_reduction <maximumf>, %36, %cst_12 [2] : vector<4x8x8xf32> to vector<4x8xf32>
    %39 = vector.shape_cast %38 : vector<4x8xf32> to vector<4x8x1xf32>
    %40 = arith.maximumf %37, %39 : vector<4x8x1xf32>
    %41 = arith.subf %37, %40 : vector<4x8x1xf32>
    %42 = math.exp %41 : vector<4x8x1xf32>
    %43 = vector.broadcast %40 : vector<4x8x1xf32> to vector<4x8x8xf32>
    %44 = arith.subf %36, %43 : vector<4x8x8xf32>
    %45 = math.exp %44 : vector<4x8x8xf32>
    %c0_13 = arith.constant 0 : index
    %c0_14 = arith.constant 0 : index
    %c0_15 = arith.constant 0 : index
    %46 = vector.load %arg8[%c0_13, %c0_14, %c0_15] : memref<4x8x1xf32, #tpu.memory_space<vmem>>, vector<4x8x1xf32>
    %47 = arith.mulf %42, %46 : vector<4x8x1xf32>
    %cst_16 = arith.constant dense<0.000000e+00> : vector<4x8xf32>
    %48 = vector.multi_reduction <add>, %45, %cst_16 [2] : vector<4x8x8xf32> to vector<4x8xf32>
    %49 = vector.shape_cast %48 : vector<4x8xf32> to vector<4x8x1xf32>
    %50 = arith.addf %47, %49 : vector<4x8x1xf32>
    %c0_17 = arith.constant 0 : index
    %c0_18 = arith.constant 0 : index
    %c0_19 = arith.constant 0 : index
    %51 = vector.load %arg8[%c0_17, %c0_18, %c0_19] : memref<4x8x1xf32, #tpu.memory_space<vmem>>, vector<4x8x1xf32>
    tpu.vector_store %arg8[%c0_17, %c0_18, %c0_19], %50 {strides = array<i32>} : memref<4x8x1xf32, #tpu.memory_space<vmem>>, vector<4x8x1xf32>,
    %c0_20 = arith.constant 0 : index
    %c0_21 = arith.constant 0 : index
    %c0_22 = arith.constant 0 : index
    %52 = vector.load %arg9[%c0_20, %c0_21, %c0_22] : memref<4x8x32xf32, #tpu.memory_space<vmem>>, vector<4x8x32xf32>
    %53 = vector.broadcast %42 : vector<4x8x1xf32> to vector<4x8x32xf32>
    %54 = arith.mulf %53, %52 : vector<4x8x32xf32>
    %55 = arith.truncf %45 : vector<4x8x8xf32> to vector<4x8x8xbf16>
    %cst_23 = arith.constant dense<0.000000e+00> : vector<4x8x32xf32>
    %56 = tpu.matmul %55, %35, %cst_23 {dimension_numbers = #tpu.dot_dimension_numbers<[2], [1], [1], [2], [0, 0, 0, 1, 1, 2], [0], [0]>} : vector<4x8x8xbf16>, vector<4x8x32xbf16>, vector<4x8x32xf32> -> vector<4x8x32xf32>
    %57 = arith.addf %54, %56 : vector<4x8x32xf32>
    %c0_24 = arith.constant 0 : index
    %c0_25 = arith.constant 0 : index
    %c0_26 = arith.constant 0 : index
    %58 = vector.load %arg9[%c0_24, %c0_25, %c0_26] : memref<4x8x32xf32, #tpu.memory_space<vmem>>, vector<4x8x32xf32>
    tpu.vector_store %arg9[%c0_24, %c0_25, %c0_26], %57 {strides = array<i32>} : memref<4x8x32xf32, #tpu.memory_space<vmem>>, vector<4x8x32xf32>,
    %c0_27 = arith.constant 0 : index
    %c0_28 = arith.constant 0 : index
    %c0_29 = arith.constant 0 : index
    %59 = vector.load %arg7[%c0_27, %c0_28, %c0_29] : memref<4x8x1xf32, #tpu.memory_space<vmem>>, vector<4x8x1xf32>
    tpu.vector_store %arg7[%c0_27, %c0_28, %c0_29], %40 {strides = array<i32>} : memref<4x8x1xf32, #tpu.memory_space<vmem>>, vector<4x8x1xf32>,
    %c0_i32_30 = arith.constant 0 : i32
    %60 = arith.cmpi eq, %arg2, %c0_i32_30 : i32
    %61 = arith.extui %60 : i1 to i32
    %c0_i32_31 = arith.constant 0 : i32
    %62 = arith.cmpi ne, %61, %c0_i32_31 : i32
    scf.if %62 {
      %c0_32 = arith.constant 0 : index
      %c0_33 = arith.constant 0 : index
      %c0_34 = arith.constant 0 : index
      %63 = vector.load %arg8[%c0_32, %c0_33, %c0_34] : memref<4x8x1xf32, #tpu.memory_space<vmem>>, vector<4x8x1xf32>
      %64 = tpu.reciprocal %63 {approx = true} : vector<4x8x1xf32> -> vector<4x8x1xf32>
      %c0_35 = arith.constant 0 : index
      %c0_36 = arith.constant 0 : index
      %c0_37 = arith.constant 0 : index
      %65 = vector.load %arg9[%c0_35, %c0_36, %c0_37] : memref<4x8x32xf32, #tpu.memory_space<vmem>>, vector<4x8x32xf32>
      %66 = vector.broadcast %64 : vector<4x8x1xf32> to vector<4x8x32xf32>
      %67 = arith.mulf %65, %66 : vector<4x8x32xf32>
      %68 = arith.truncf %67 : vector<4x8x32xf32> to vector<4x8x32xbf16>
      %c0_38 = arith.constant 0 : index
      %c0_39 = arith.constant 0 : index
      %c0_40 = arith.constant 0 : index
      %c0_41 = arith.constant 0 : index
      %69 = vector.load %arg6[%c0_38, %c0_39, %c0_40, %c0_41] : memref<1x4x8x32xbf16, #tpu.memory_space<vmem>>, vector<1x4x8x32xbf16>
      %70 = vector.shape_cast %69 : vector<1x4x8x32xbf16> to vector<4x8x32xbf16>
      %71 = vector.shape_cast %68 : vector<4x8x32xbf16> to vector<1x4x8x32xbf16>
      tpu.vector_store %arg6[%c0_38, %c0_39, %c0_40, %c0_41], %71 {strides = array<i32>} : memref<1x4x8x32xbf16, #tpu.memory_space<vmem>>, vector<1x4x8x32xbf16>,
    } else {
    }
    return
  }
  func.func @transform_0(%arg0: i32, %arg1: i32, %arg2: i32) -> (i32, i32, i32) {
    %c0_i32 = arith.constant 0 : i32
    %c0_i32_0 = arith.constant 0 : i32
    return %arg0, %arg1, %c0_i32 : i32, i32, i32
  }
  func.func @transform_1(%arg0: i32, %arg1: i32, %arg2: i32) -> (i32, i32, i32) {
    %c1_i32 = arith.constant 1 : i32
    %c0_i32 = arith.constant 0 : i32
    return %arg0, %arg2, %c1_i32 : i32, i32, i32
  }
  func.func @transform_2(%arg0: i32, %arg1: i32, %arg2: i32) -> (i32, i32, i32) {
    %c2_i32 = arith.constant 2 : i32
    %c0_i32 = arith.constant 0 : i32
    return %arg0, %arg2, %c2_i32 : i32, i32, i32
  }
  func.func @transform_3(%arg0: i32, %arg1: i32, %arg2: i32) -> (i32, i32, i32, i32) {
    %c0_i32 = arith.constant 0 : i32
    %c0_i32_0 = arith.constant 0 : i32
    %c0_i32_1 = arith.constant 0 : i32
    return %arg0, %c0_i32, %arg1, %c0_i32_0 : i32, i32, i32, i32
  }
}

module attributes {stable_mosaic.version = 11 : i64} {
  func.func @_linear_kernel(%arg0: i32, %arg1: i32, %arg2: i32, %arg3: memref<16x32xbf16, #tpu.memory_space<vmem>>, %arg4: memref<32x384xbf16, #tpu.memory_space<vmem>>, %arg5: memref<1x384xf32, #tpu.memory_space<vmem>>, %arg6: memref<16x384xbf16, #tpu.memory_space<vmem>>, %arg7: memref<16x384xf32, #tpu.memory_space<vmem>>) attributes {dimension_semantics = [#tpu.dimension_semantics<parallel>, #tpu.dimension_semantics<parallel>, #tpu.dimension_semantics<arbitrary>], iteration_bounds = array<i64: 1, 1, 1>, scalar_prefetch = 0 : i64, scratch_operands = 1 : i64, tpu.core_type = #tpu.core_type<tc>, window_params = [{transform_indices = @transform_0, window_bounds = array<i64: 16, 32>}, {transform_indices = @transform_1, window_bounds = array<i64: 32, 384>}, {transform_indices = @transform_2, window_bounds = array<i64: 1, 384>}, {transform_indices = @transform_3, window_bounds = array<i64: 16, 384>}]} {
    %c0_i32 = arith.constant 0 : i32
    %0 = arith.cmpi eq, %arg2, %c0_i32 : i32
    %1 = arith.extui %0 : i1 to i32
    %c0_i32_0 = arith.constant 0 : i32
    %2 = arith.cmpi ne, %1, %c0_i32_0 : i32
    scf.if %2 {
      %cst_10 = arith.constant 0.000000e+00 : f32
      %12 = vector.broadcast %cst_10 : f32 to vector<16x384xf32>
      %c0_11 = arith.constant 0 : index
      %c0_12 = arith.constant 0 : index
      %13 = vector.load %arg7[%c0_11, %c0_12] : memref<16x384xf32, #tpu.memory_space<vmem>>, vector<16x384xf32>
      tpu.vector_store %arg7[%c0_11, %c0_12], %12 {strides = array<i32>} : memref<16x384xf32, #tpu.memory_space<vmem>>, vector<16x384xf32>,
    } else {
    }
    %c0 = arith.constant 0 : index
    %c0_1 = arith.constant 0 : index
    %3 = vector.load %arg7[%c0, %c0_1] : memref<16x384xf32, #tpu.memory_space<vmem>>, vector<16x384xf32>
    %c0_2 = arith.constant 0 : index
    %c0_3 = arith.constant 0 : index
    %4 = vector.load %arg3[%c0_2, %c0_3] : memref<16x32xbf16, #tpu.memory_space<vmem>>, vector<16x32xbf16>
    %c0_4 = arith.constant 0 : index
    %c0_5 = arith.constant 0 : index
    %5 = vector.load %arg4[%c0_4, %c0_5] : memref<32x384xbf16, #tpu.memory_space<vmem>>, vector<32x384xbf16>
    %cst = arith.constant dense<0.000000e+00> : vector<16x384xf32>
    %6 = tpu.matmul %4, %5, %cst {dimension_numbers = #tpu.dot_dimension_numbers<[1], [0], [0], [1], [0, 0, 1, 1], [], []>} : vector<16x32xbf16>, vector<32x384xbf16>, vector<16x384xf32> -> vector<16x384xf32>
    %7 = arith.addf %3, %6 : vector<16x384xf32>
    %c0_6 = arith.constant 0 : index
    %c0_7 = arith.constant 0 : index
    %8 = vector.load %arg7[%c0_6, %c0_7] : memref<16x384xf32, #tpu.memory_space<vmem>>, vector<16x384xf32>
    tpu.vector_store %arg7[%c0_6, %c0_7], %7 {strides = array<i32>} : memref<16x384xf32, #tpu.memory_space<vmem>>, vector<16x384xf32>,
    %c0_i32_8 = arith.constant 0 : i32
    %9 = arith.cmpi eq, %arg2, %c0_i32_8 : i32
    %10 = arith.extui %9 : i1 to i32
    %c0_i32_9 = arith.constant 0 : i32
    %11 = arith.cmpi ne, %10, %c0_i32_9 : i32
    scf.if %11 {
      %c0_10 = arith.constant 0 : index
      %c0_11 = arith.constant 0 : index
      %12 = vector.load %arg7[%c0_10, %c0_11] : memref<16x384xf32, #tpu.memory_space<vmem>>, vector<16x384xf32>
      %c0_12 = arith.constant 0 : index
      %c0_13 = arith.constant 0 : index
      %13 = vector.load %arg5[%c0_12, %c0_13] : memref<1x384xf32, #tpu.memory_space<vmem>>, vector<1x384xf32>
      %14 = vector.broadcast %13 : vector<1x384xf32> to vector<16x384xf32>
      %15 = arith.addf %12, %14 : vector<16x384xf32>
      %16 = arith.truncf %15 : vector<16x384xf32> to vector<16x384xbf16>
      %c0_14 = arith.constant 0 : index
      %c0_15 = arith.constant 0 : index
      %17 = vector.load %arg6[%c0_14, %c0_15] : memref<16x384xbf16, #tpu.memory_space<vmem>>, vector<16x384xbf16>
      tpu.vector_store %arg6[%c0_14, %c0_15], %16 {strides = array<i32>} : memref<16x384xbf16, #tpu.memory_space<vmem>>, vector<16x384xbf16>,
    } else {
    }
    return
  }
  func.func @transform_0(%arg0: i32, %arg1: i32, %arg2: i32) -> (i32, i32) {
    %c0_i32 = arith.constant 0 : i32
    return %arg0, %arg2 : i32, i32
  }
  func.func @transform_1(%arg0: i32, %arg1: i32, %arg2: i32) -> (i32, i32) {
    %c0_i32 = arith.constant 0 : i32
    return %arg2, %arg1 : i32, i32
  }
  func.func @transform_2(%arg0: i32, %arg1: i32, %arg2: i32) -> (i32, i32) {
    %c0_i32 = arith.constant 0 : i32
    %c0_i32_0 = arith.constant 0 : i32
    return %c0_i32, %arg1 : i32, i32
  }
  func.func @transform_3(%arg0: i32, %arg1: i32, %arg2: i32) -> (i32, i32) {
    %c0_i32 = arith.constant 0 : i32
    return %arg0, %arg1 : i32, i32
  }
}

module attributes {stable_mosaic.version = 11 : i64} {
  func.func @_linear_kernel(%arg0: i32, %arg1: i32, %arg2: i32, %arg3: memref<16x128xbf16, #tpu.memory_space<vmem>>, %arg4: memref<128x32xbf16, #tpu.memory_space<vmem>>, %arg5: memref<1x32xf32, #tpu.memory_space<vmem>>, %arg6: memref<16x32xf32, #tpu.memory_space<vmem>>, %arg7: memref<16x32xf32, #tpu.memory_space<vmem>>) attributes {dimension_semantics = [#tpu.dimension_semantics<parallel>, #tpu.dimension_semantics<parallel>, #tpu.dimension_semantics<arbitrary>], iteration_bounds = array<i64: 1, 1, 1>, scalar_prefetch = 0 : i64, scratch_operands = 1 : i64, tpu.core_type = #tpu.core_type<tc>, window_params = [{transform_indices = @transform_0, window_bounds = array<i64: 16, 128>}, {transform_indices = @transform_1, window_bounds = array<i64: 128, 32>}, {transform_indices = @transform_2, window_bounds = array<i64: 1, 32>}, {transform_indices = @transform_3, window_bounds = array<i64: 16, 32>}]} {
    %c0_i32 = arith.constant 0 : i32
    %0 = arith.cmpi eq, %arg2, %c0_i32 : i32
    %1 = arith.extui %0 : i1 to i32
    %c0_i32_0 = arith.constant 0 : i32
    %2 = arith.cmpi ne, %1, %c0_i32_0 : i32
    scf.if %2 {
      %cst_10 = arith.constant 0.000000e+00 : f32
      %12 = vector.broadcast %cst_10 : f32 to vector<16x32xf32>
      %c0_11 = arith.constant 0 : index
      %c0_12 = arith.constant 0 : index
      %13 = vector.load %arg7[%c0_11, %c0_12] : memref<16x32xf32, #tpu.memory_space<vmem>>, vector<16x32xf32>
      tpu.vector_store %arg7[%c0_11, %c0_12], %12 {strides = array<i32>} : memref<16x32xf32, #tpu.memory_space<vmem>>, vector<16x32xf32>,
    } else {
    }
    %c0 = arith.constant 0 : index
    %c0_1 = arith.constant 0 : index
    %3 = vector.load %arg7[%c0, %c0_1] : memref<16x32xf32, #tpu.memory_space<vmem>>, vector<16x32xf32>
    %c0_2 = arith.constant 0 : index
    %c0_3 = arith.constant 0 : index
    %4 = vector.load %arg3[%c0_2, %c0_3] : memref<16x128xbf16, #tpu.memory_space<vmem>>, vector<16x128xbf16>
    %c0_4 = arith.constant 0 : index
    %c0_5 = arith.constant 0 : index
    %5 = vector.load %arg4[%c0_4, %c0_5] : memref<128x32xbf16, #tpu.memory_space<vmem>>, vector<128x32xbf16>
    %cst = arith.constant dense<0.000000e+00> : vector<16x32xf32>
    %6 = tpu.matmul %4, %5, %cst {dimension_numbers = #tpu.dot_dimension_numbers<[1], [0], [0], [1], [0, 0, 1, 1], [], []>} : vector<16x128xbf16>, vector<128x32xbf16>, vector<16x32xf32> -> vector<16x32xf32>
    %7 = arith.addf %3, %6 : vector<16x32xf32>
    %c0_6 = arith.constant 0 : index
    %c0_7 = arith.constant 0 : index
    %8 = vector.load %arg7[%c0_6, %c0_7] : memref<16x32xf32, #tpu.memory_space<vmem>>, vector<16x32xf32>
    tpu.vector_store %arg7[%c0_6, %c0_7], %7 {strides = array<i32>} : memref<16x32xf32, #tpu.memory_space<vmem>>, vector<16x32xf32>,
    %c0_i32_8 = arith.constant 0 : i32
    %9 = arith.cmpi eq, %arg2, %c0_i32_8 : i32
    %10 = arith.extui %9 : i1 to i32
    %c0_i32_9 = arith.constant 0 : i32
    %11 = arith.cmpi ne, %10, %c0_i32_9 : i32
    scf.if %11 {
      %c0_10 = arith.constant 0 : index
      %c0_11 = arith.constant 0 : index
      %12 = vector.load %arg7[%c0_10, %c0_11] : memref<16x32xf32, #tpu.memory_space<vmem>>, vector<16x32xf32>
      %c0_12 = arith.constant 0 : index
      %c0_13 = arith.constant 0 : index
      %13 = vector.load %arg5[%c0_12, %c0_13] : memref<1x32xf32, #tpu.memory_space<vmem>>, vector<1x32xf32>
      %14 = vector.broadcast %13 : vector<1x32xf32> to vector<16x32xf32>
      %15 = arith.addf %12, %14 : vector<16x32xf32>
      %c0_14 = arith.constant 0 : index
      %c0_15 = arith.constant 0 : index
      %16 = vector.load %arg6[%c0_14, %c0_15] : memref<16x32xf32, #tpu.memory_space<vmem>>, vector<16x32xf32>
      tpu.vector_store %arg6[%c0_14, %c0_15], %15 {strides = array<i32>} : memref<16x32xf32, #tpu.memory_space<vmem>>, vector<16x32xf32>,
    } else {
    }
    return
  }
  func.func @transform_0(%arg0: i32, %arg1: i32, %arg2: i32) -> (i32, i32) {
    %c0_i32 = arith.constant 0 : i32
    return %arg0, %arg2 : i32, i32
  }
  func.func @transform_1(%arg0: i32, %arg1: i32, %arg2: i32) -> (i32, i32) {
    %c0_i32 = arith.constant 0 : i32
    return %arg2, %arg1 : i32, i32
  }
  func.func @transform_2(%arg0: i32, %arg1: i32, %arg2: i32) -> (i32, i32) {
    %c0_i32 = arith.constant 0 : i32
    %c0_i32_0 = arith.constant 0 : i32
    return %c0_i32, %arg1 : i32, i32
  }
  func.func @transform_3(%arg0: i32, %arg1: i32, %arg2: i32) -> (i32, i32) {
    %c0_i32 = arith.constant 0 : i32
    return %arg0, %arg1 : i32, i32
  }
}

</mosaic_0001>

<bundles_post_ra>
// kernel: attention_forward.3
= control target key start
LH: loop header
LB: loop body
LE: loop exit
PB: predicated region body
PF: predicated region fallthrough
CT: control target
= control target key end

     0   :  { %8 = vsyncpa [#allocation4], 0  ;;  %s320_s12 = smov [#allocation3]   ;;  %s376_s0 = inlined_call_operand.vmem [shape: bf16[16,32], index: 0, kind: input, shape index: {}]   ;;  %s377_s1 = inlined_call_operand.hbm [shape: bf16[32,384], index: 1, kind: input, shape index: {}]   ;;  %s378_s2 = inlined_call_operand.vmem [shape: f32[1,384], index: 2, kind: input, shape index: {}]   ;;  %s379_s3 = inlined_call_operand.vmem [shape: bf16[16,384], index: 3, kind: output, shape index: {}]  }
   0x1   :  { %s16_s13 = sshll.u32 %s320_s12, 4  ;;  %s296_s16 = scalar_lea.hbm %s377_s1, 768  ;;  %s17_s13 = int_to_ptr.vmem [resolvable:$true] %s16_s13 }
   0x2   :  { %p297_p0 = scmp.ne.s32.totalorder %s377_s1, %s296_s16  ;;  %p300_p1 = scmp.lt.u32.totalorder %s296_s16, %s377_s1 }
   0x4   :  { %p302_p2 = pnand %p300_p1, %p297_p0 }
   0x6   :  { %305 = shalt.err (!%p302_p2)
}
   0x7   :  { %s306_s21 = scalar_lea.vmem %s17_s13, 768  ;;  %p311_p4 = scmp.lt.s32.totalorder %s17_s13, %s17_s13 }
   0x8   :  { %p307_p3 = scmp.ne.s32.totalorder %s17_s13, %s306_s21  ;;  %p312_p5 = scmp.lt.s32.totalorder %s306_s21, %s306_s21 }
   0xa   :  { %p313_p6 = por %p312_p5, %p311_p4 }
   0xc   :  { %p314_p7 = pnand %p313_p6, %p307_p3 }
   0xe   :  { %317 = shalt.err (!%p314_p7)
}
   0xf   :  { %s321_s22 = smov 192   ;;  %s322_s23 = smov 12  }
  0x10   :  { %22 = dma.hbm_to_vmem [thread:$0]  %s377_s1, 768, %s17_s13, [#allocation4], %s321_s22, %s321_s22, %s322_s23  }
  0x11   :  { %318 = dma.done.wait [#allocation4], 768  }
  0x12   :  { %319 = vsyncadd [#allocation4], 4294966528  ;;  %v323_v0 = vmov 0.0   ;;  %vm324_vm0 = vmmov 0   ;;  %v325_v1 = vmov 0   ;;  %v295_v8 = vld [vmem:[%s376_s0] sm:$0xff]   ;;  %v203_v9 = vlaneseq }
  0x13   :  { %273 = vmatprep.subr.bf16.mxu1 %v323_v0  ;;  %277 = vmatprep.mubr.msk.bf16.mxu1 %vm324_vm0, %v323_v0  ;;  %v287_v2 = vld [vmem:[#allocation3 + $0x4] ss:$12 sps:$4 sm:$0xff]   ;;  %v289_v3 = vld [vmem:[#allocation3 + $0x8] ss:$12 sps:$4 sm:$0xff]   ;;  %v290_v4 = vld [vmem:[#allocation3] ss:$12 sps:$4 sm:$0xff]  }
  0x14   :  { %128 = vmatprep.mubr.bf16.mxu0 %v325_v1  ;;  %96 = vmatprep.subr.bf16.mxu0 %v287_v2  ;;  %v291_v5 = vld [vmem:[#allocation3 + $0x1c] ss:$12 sps:$4 sm:$0xff]   ;;  %v293_v6 = vld [vmem:[#allocation3 + $0x20] ss:$12 sps:$4 sm:$0xff]   ;;  %v294_v7 = vld [vmem:[#allocation3 + $0x18] ss:$12 sps:$4 sm:$0xff]  }
  0x15   :  { %274 = vmatpush3.bf16.msra.mxu1 %v289_v3  ;;  %97 = vmatpush1.bf16.msra.mxu0 %v290_v4  ;;  %vm92_vm1 = vcmask 261120   ;;  %v204_v10 = vshrl.u32 %v203_v9, 7  ;;  %v201_v12 = vld [vmem:[%s378_s2] sm:$0x7] }
  0x16   :  { %275 = vmatprep.subr.bf16.mxu1 %v323_v0  ;;  %98 = vmatprep.subr.bf16.mxu0 %v291_v5 }
  0x17   :  { %v213_v11 = vsub.s32 2, %v204_v10  ;;  %v205_v13 = vsub.s32 0, %v204_v10  ;;  %v209_v14 = vsub.s32 1, %v204_v10 }
  0x19   :  { %276 = vmatpush3.bf16.msra.mxu1 %v293_v6  ;;  %99 = vmatpush1.bf16.msra.mxu0 %v294_v7  ;;  %v214_v15 = vrot.slane %v201_v12, %v213_v11  ;;  %v206_v16 = vrot.slane %v201_v12, %v205_v13  ;;  %v210_v17 = vrot.slane %v201_v12, %v209_v14 }
  0x1c   :  { %278 = vmatmul.mubr.msk.bf16.vlgmr.msra.gmra.mrb[0].mxu1 %vm92_vm1, %v295_v8  ;;  %260 = vmatmul.mubr.msk.bf16.vlgmr.msra.gmra.mrb[0].mxu0 %vm92_vm1, %v295_v8 }
  0xef   :  { %v173_v18 = vpop.f32.mrb[0].mxu1  ;;  %v130_v20 = vpop.f32.mrb[0].mxu0 }
  0xf0   :  { %v220_v19 = vadd.f32 %v214_v15, %v173_v18  ;;  %v279_v21 = vpop.f32.mrb[1].mxu1  ;;  %v218_v22 = vadd.f32 %v206_v16, %v130_v20  ;;  %v132_v23 = vpop.f32.mrb[1].mxu0 }
  0xf1   :  { %v176_v24 = vpop.f32.mrb[2].mxu1  ;;  %v219_v26 = vadd.f32 %v210_v17, %v132_v23  ;;  %v134_v28 = vpop.f32.mrb[2].mxu0 }
  0xf2   :  { %v267_v25 = vpack.c.bf16 %v220_v19, %v220_v19  ;;  %v223_v27 = vadd.f32 %v214_v15, %v176_v24  ;;  %v280_v29 = vpop.f32.mrb[3].mxu1  ;;  %v221_v30 = vadd.f32 %v206_v16, %v134_v28  ;;  %v136_v31 = vpop.f32.mrb[3].mxu0 }
  0xf3   :  { %v266_v32 = vpack.c.bf16 %v219_v26, %v218_v22  ;;  %v222_v34 = vadd.f32 %v210_v17, %v136_v31 }
  0xf4   :  { %245 = vst [vmem:[%s379_s3 + $0x8] sm:$0xf] %v267_v25  ;;  %v269_v33 = vpack.c.bf16 %v223_v27, %v223_v27 }
  0xf5   :  { %244 = vst [vmem:[%s379_s3] sm:$0xff] %v266_v32  ;;  %v268_v35 = vpack.c.bf16 %v222_v34, %v221_v30 }
  0xf6   :  { %247 = vst [vmem:[%s379_s3 + $0x14] sm:$0xf] %v269_v33 }
  0xf7   :  { %246 = vst [vmem:[%s379_s3 + $0xc] sm:$0xff] %v268_v35 }
  0xf8   :  { %252 = vsyncpa [#allocation4], 1 }

// kernel: attention_forward.5
= control target key start
LH: loop header
LB: loop body
LE: loop exit
PB: predicated region body
PF: predicated region fallthrough
CT: control target
= control target key end

     0   :  { %v252_v1 = vmov 0.0   ;;  %vm253_vm0 = vmmov 0   ;;  %vm20_vm1 = vcmask 261120   ;;  %s325_s0 = inlined_call_operand.vmem [shape: bf16[16,128], index: 0, kind: input, shape index: {}]   ;;  %s326_s1 = inlined_call_operand.vmem [shape: bf16[128,32], index: 1, kind: input, shape index: {}]   ;;  %s327_s2 = inlined_call_operand.vmem [shape: f32[1,32], index: 2, kind: input, shape index: {}]   ;;  %s328_s3 = inlined_call_operand.hbm [shape: f32[16,32], index: 3, kind: output, shape index: {}]  }
   0x1   :  { %v219_v0 = vld [vmem:[%s326_s1] sm:$0xff]   ;;  %194 = vmatprep.subr.bf16.mxu0 %v252_v1  ;;  %v220_v2 = vld [vmem:[%s326_s1 + $0x8] sm:$0xff]   ;;  %210 = vmatprep.mubr.msk.bf16.mxu0 %vm253_vm0, %v252_v1  ;;  %21 = vst.msk [vmem:[#allocation2] sm:$0xff] %vm20_vm1, %v252_v1  ;;  %22 = vst.msk [vmem:[#allocation2 + $0x8] sm:$0xff] %vm20_vm1, %v252_v1 }
   0x2   :  { %195 = vmatpush3.bf16.msra.mxu0 %v219_v0  ;;  %v221_v3 = vld [vmem:[%s326_s1 + $0x10] sm:$0xff]  }
   0x3   :  { %196 = vmatprep.subr.bf16.mxu0 %v252_v1 }
   0x6   :  { %197 = vmatpush3.bf16.msra.mxu0 %v220_v2 }
   0x7   :  { %198 = vmatprep.subr.bf16.mxu0 %v252_v1 }
   0x8   :  { %8 = vsyncpa [#allocation4], 0  ;;  %v222_v4 = vld [vmem:[%s326_s1 + $0x18] sm:$0xff]   ;;  %v223_v5 = vld [vmem:[%s326_s1 + $0x20] sm:$0xff]   ;;  %s254_s4 = smov [#allocation3]  }
   0x9   :  { %v224_v6 = vld [vmem:[%s326_s1 + $0x28] sm:$0xff]   ;;  %v225_v7 = vld [vmem:[%s326_s1 + $0x30] sm:$0xff]   ;;  %v226_v8 = vld [vmem:[%s326_s1 + $0x38] sm:$0xff]  }
   0xa   :  { %199 = vmatpush3.bf16.msra.mxu0 %v221_v3  ;;  %v227_v9 = vld [vmem:[%s325_s0] sm:$0xff]   ;;  %v24_v12 = vld [vmem:[#allocation2 + $0x8] sm:$0xff]  ;;  %s164_s0 = sshll.u32 %s254_s4, 4  ;;  %s165_s0 = int_to_ptr.vmem [resolvable:$true] %s164_s0 }
   0xb   :  { %200 = vmatprep.subr.bf16.mxu0 %v252_v1  ;;  %v23_v10 = vld [vmem:[#allocation2] sm:$0xff]  ;;  %s228_s5 = scalar_lea.vmem %s165_s0, 256  ;;  %p233_p1 = scmp.lt.s32.totalorder %s165_s0, %s165_s0 }
   0xc   :  { %v184_v18 = vld [vmem:[%s327_s2] ss:$0 sm:$0xff]  ;;  %p229_p0 = scmp.ne.s32.totalorder %s165_s0, %s228_s5  ;;  %p234_p2 = scmp.lt.s32.totalorder %s228_s5, %s228_s5 }
   0xe   :  { %201 = vmatpush3.bf16.msra.mxu0 %v222_v4  ;;  %p235_p3 = por %p234_p2, %p233_p1 }
   0xf   :  { %202 = vmatprep.subr.bf16.mxu0 %v252_v1 }
  0x10   :  { %p236_p4 = pnand %p235_p3, %p229_p0 }
  0x12   :  { %203 = vmatpush3.bf16.msra.mxu0 %v223_v5 }
  0x13   :  { %204 = vmatprep.subr.bf16.mxu0 %v252_v1 }
  0x16   :  { %205 = vmatpush3.bf16.msra.mxu0 %v224_v6 }
  0x17   :  { %206 = vmatprep.subr.bf16.mxu0 %v252_v1 }
  0x1a   :  { %207 = vmatpush3.bf16.msra.mxu0 %v225_v7 }
  0x1b   :  { %208 = vmatprep.subr.bf16.mxu0 %v252_v1 }
  0x1e   :  { %209 = vmatpush3.bf16.msra.mxu0 %v226_v8 }
  0x21   :  { %211 = vmatmul.mubr.bf16.vlgmr.msra.gmra.mrb[0].mxu0 %v227_v9 }
  0xf4   :  { %v131_v11 = vpop.f32.mrb[0].mxu0 }
  0xf5   :  { %v138_v13 = vadd.f32 %v131_v11, %v23_v10  ;;  %v212_v14 = vpop.f32.mrb[1].mxu0 }
  0xf6   :  { %v134_v15 = vpop.f32.mrb[2].mxu0 }
  0xf7   :  { %141 = vst.msk [vmem:[#allocation2] sm:$0xff] %vm20_vm1, %v138_v13  ;;  %v139_v16 = vadd.f32 %v134_v15, %v24_v12  ;;  %v213_v17 = vpop.f32.mrb[3].mxu0 }
  0xf9   :  { %142 = vst.msk [vmem:[#allocation2 + $0x8] sm:$0xff] %vm20_vm1, %v139_v16 }
  0xfe   :  { %v146_v19 = vld [vmem:[#allocation2] sm:$0xff] }
  0xff   :  { %v155_v20 = vadd.f32 %v184_v18, %v146_v19 }
 0x100   :  { %v147_v21 = vld [vmem:[#allocation2 + $0x8] sm:$0xff] }
 0x101   :  { %v156_v22 = vadd.f32 %v184_v18, %v147_v21  ;;  %157 = vst.msk [vmem:[#allocation3] sm:$0xff] %vm20_vm1, %v155_v20 }
 0x103   :  { %158 = vst.msk [vmem:[#allocation3 + $0x8] sm:$0xff] %vm20_vm1, %v156_v22 }
 0x104   :  { %239 = shalt.err (!%p236_p4)
}
 0x105   :  { %s240_s7 = scalar_lea.hbm %s328_s3, 256 }
 0x106   :  { %p241_p5 = scmp.ne.s32.totalorder %s328_s3, %s240_s7  ;;  %p244_p6 = scmp.lt.u32.totalorder %s240_s7, %s328_s3 }
 0x108   :  { %p246_p7 = pnand %p244_p6, %p241_p5 }
 0x10a   :  { %249 = shalt.err (!%p246_p7)
}
 0x10b   :  { %s255_s12 = smov 128   ;;  %s256_s13 = smov 8  }
 0x10c   :  { %170 = dma.vmem_to_hbm [thread:$0]  %s165_s0, 256, %s328_s3, [#allocation4], %s255_s12, %s255_s12, %s256_s13  }
 0x10d   :  { %250 = dma.done.wait [#allocation4], 256  }
 0x10e   :  { %251 = vsyncadd [#allocation4], 4294967040 }
 0x10f   :  { %174 = vsyncpa [#allocation4], 1 }

// kernel: attention_forward.4
= control target key start
LH: loop header
LB: loop body
LE: loop exit
PB: predicated region body
PF: predicated region fallthrough
CT: control target
= control target key end

     0   :  { %s1218_s12 = smov 0   ;;  %s1220_s13 = smov 0   ;;  %s1406_s0 = inlined_call_operand.vmem [shape: bf16[2,8,384], index: 0, kind: input, shape index: {}, may-alias: {0,1,2}]   ;;  %s1407_s1 = inlined_call_operand.vmem [shape: bf16[2,8,384], index: 1, kind: input, shape index: {}, may-alias: {0,1,2}]   ;;  %s1408_s2 = inlined_call_operand.vmem [shape: bf16[2,8,384], index: 2, kind: input, shape index: {}, may-alias: {0,1,2}]   ;;  %s1409_s3 = inlined_call_operand.vmem [shape: bf16[2,4,8,32], index: 3, kind: output, shape index: {}]  }
   0x1   :  { %s1222_s14 = smov 0  }
   0x2 LB: > { %s32_s15 = sadd.s32 1, %s1185_s13  ;;  %p1026_p0 = scmp.ge.s32.totalorder %s1189_s14, 1  ;;  %s1189_s14 = sphi %s1222_s14, %s13_s14   ;;  %s1185_s13 = sphi %s1220_s13, %s1411_s13   ;;  %s1181_s12 = sphi %s1218_s12, %s1410_s12  }
   0x3   : > { %p34_p1 = scmp.ge.s32.totalorder %s32_s15, 2  ;;  %p198_p2 = scmp.lt.s32.totalorder %s1189_s14, 3 }
   0x5   : > { %s1413_s15 = smov (%p34_p1, %s32_s15), 0  ;;  %p199_p3 = pnand %p1026_p0, %p198_p2 }
   0x6   : > { %p249_p4 = scmp.lt.s32.totalorder (!%p199_p3), %s1181_s12, 1  ;;  %vm300_vm0 = vcmask (!%p199_p3), 261120   ;;  %v1191_v0 = vmov (!%p199_p3), 0.0   ;;  %vm1192_vm1 = vmmov (!%p199_p3), 0   ;;  %s1193_s23 = smov (!%p199_p3), 64   ;;  %vm518_vm2 = vcmask (!%p199_p3), 64512  }
   0x7   : > { %202 = sbr.rel (%p199_p3) target bundleno = 947 (0x3b3), region = 32  ;;  %1061 = vmatprep.subr.bf16.mxu0 (!%p199_p3), %v1191_v0  ;;  %301 = vst.msk [vmem:[#allocation4] sm:$0xff] (!%p199_p3), %vm300_vm0, %v1191_v0  ;;  %302 = vst.msk [vmem:[#allocation4 + $0x8] sm:$0xff] (!%p199_p3), %vm300_vm0, %v1191_v0  ;;  %1063 = vmatprep.mubr.msk.bf16.mxu0 (!%p199_p3), %vm1192_vm1, %v1191_v0  ;;  %s1194_s24 = smov (!%p199_p3), 96   ;;  %vm291_vm3 = vcmask (!%p199_p3), 7168   ;;  %v1196_v13 = vmov (!%p199_p3), -inf  }
   0x8   : > { %303 = vst.msk [vmem:[#allocation4 + $0x10] sm:$0xff] (!%p199_p3), %vm300_vm0, %v1191_v0  ;;  %304 = vst.msk [vmem:[#allocation4 + $0x18] sm:$0xff] (!%p199_p3), %vm300_vm0, %v1191_v0  ;;  %1067 = vmatprep.subr.bf16.mxu1 (!%p199_p3), %v1191_v0  ;;  %1069 = vmatprep.mubr.msk.bf16.mxu1 (!%p199_p3), %vm1192_vm1, %v1191_v0  ;;  %s1195_s25 = smov (!%p199_p3), 32   ;;  %v1197_v19 = vmov (!%p199_p3), 0   ;;  %vm643_vm4 = vcmask (!%p199_p3), 1043456   ;;  %vm880_vm5 = vcmask (!%p199_p3), 257024  }
   0x9   : > { %292 = vst.msk [vmem:[#allocation2] sm:$0xff] (!%p199_p3), %vm291_vm3, %v1196_v13  ;;  %293 = vst.msk [vmem:[#allocation2 + $0x8] sm:$0xff] (!%p199_p3), %vm291_vm3, %v1196_v13  ;;  %1141 = vset.pattern.permute.xlu1 (!%p199_p3), %v1197_v19  ;;  %1142 = vset.pattern.permute.xlu0 (!%p199_p3), %v1197_v19 }
   0xa   : > { %294 = vst.msk [vmem:[#allocation2 + $0x10] sm:$0xff] (!%p199_p3), %vm291_vm3, %v1196_v13  ;;  %295 = vst.msk [vmem:[#allocation2 + $0x18] sm:$0xff] (!%p199_p3), %vm291_vm3, %v1196_v13 }
   0xb   : > { %296 = vst.msk [vmem:[#allocation3] sm:$0xff] (!%p199_p3), %vm291_vm3, %v1191_v0  ;;  %297 = vst.msk [vmem:[#allocation3 + $0x8] sm:$0xff] (!%p199_p3), %vm291_vm3, %v1191_v0 }
   0xc   : > { %298 = vst.msk [vmem:[#allocation3 + $0x10] sm:$0xff] (!%p199_p3), %vm291_vm3, %v1191_v0  ;;  %299 = vst.msk [vmem:[#allocation3 + $0x18] sm:$0xff] (!%p199_p3), %vm291_vm3, %v1191_v0 }
   0xe   : > { %s1415_s12 = smov (!%p249_p4, %s1181_s12), 1 }
   0xf   : > { %s1253_s16 = smul.u32 12, %s1415_s12  ;;  %s1044_s29 = sshll.u32 %s1415_s12, 4 }
  0x10   : > { %v1311_v35 = vld [vmem:[#allocation2] sm:$0xff]  ;;  %v1327_v41 = vld [vmem:[#allocation2 + $0x8] sm:$0xff]  ;;  %s1384_s5 = scalar_lea.vmem %s1409_s3, %s1044_s29 }
  0x11   : > { %s959_s19 = scalar_lea.vmem %s1407_s1, %s1253_s16  ;;  %s257_s22 = scalar_lea.vmem %s1406_s0, %s1253_s16  ;;  %v1329_v42 = vld [vmem:[#allocation2 + $0x10] sm:$0xff]  ;;  %v517_v49 = vld [vmem:[#allocation2 + $0x18] sm:$0xff] }
  0x12   : > { %v1032_v1 = vld [vmem:[%s959_s19 + $0x4] sm:$0xf]  ;;  %v305_v3 = vld [vmem:[%s257_s22] sm:$0xf]  ;;  %s965_s28 = scalar_lea.vmem %s1408_s2, %s1253_s16 }
  0x13   : > { %317 = vrot.lane.b32.xlu1 %v1032_v1, %s1193_s23  ;;  %315 = vrot.lane.b32.xlu0 %v1032_v1, %s1194_s24  ;;  %v334_v2 = vsel %vm300_vm0, %v1032_v1, 0  ;;  %v1033_v39 = vld [vmem:[%s965_s28 + $0x8] sm:$0xf] }
  0x14   : > { %1062 = vmatpush3.bf16.xpose.msra.mxu0 %v334_v2  ;;  %v645_v40 = vsel %vm643_vm4, %v1033_v39, 0 }
  0x15   : > { %1073 = vmatprep.subr.bf16.mxu0 %v1191_v0 }
  0x17   : > { %307 = vrot.lane.b32.xlu0 %v305_v3, %s1194_s24  ;;  %319 = vrot.lane.b32.xlu1 %v1032_v1, %s1195_s25 }
  0x1b   : > { %309 = vrot.lane.b32.xlu0 %v305_v3, %s1193_s23  ;;  %1064 = vmatmul.mubr.msk.bf16.vlgmr.msra.gmra.mrb[0].mxu0 %vm300_vm0, %v305_v3 }
  0x1c   : > { %311 = vrot.lane.b32.xlu1 %v305_v3, %s1195_s25  ;;  %1075 = vmatprep.mubr.msk.bf16.mxu0 %vm1192_vm1, %v1191_v0 }
  0x85   : > { %v318_v4 = vpop.permute.xlu1 %317  ;;  %v316_v5 = vpop.permute.xlu0 %315 }
  0x86   : > { %v426_v6 = vsel %vm300_vm0, %v318_v4, 0  ;;  %v380_v7 = vsel %vm300_vm0, %v316_v5, 0 }
  0x87   : > { %1068 = vmatpush3.bf16.xpose.msra.mxu1 %v380_v7  ;;  %1074 = vmatpush3.bf16.xpose.msra.mxu0 %v426_v6 }
  0x88   : > { %1079 = vmatprep.subr.bf16.mxu1 %v1191_v0  ;;  %1085 = vmatprep.subr.bf16.mxu0 %v1191_v0 }
  0x89   : > { %v308_v8 = vpop.permute.xlu0 %307  ;;  %v320_v9 = vpop.permute.xlu1 %319 }
  0x8a   : > { %v472_v10 = vsel %vm300_vm0, %v320_v9, 0 }
  0x8d   : > { %v310_v11 = vpop.permute.xlu0 %309 }
  0x8e   : > { %1070 = vmatmul.mubr.msk.bf16.vlgmr.msra.gmra.mrb[0].mxu1 %vm300_vm0, %v308_v8  ;;  %1076 = vmatmul.mubr.msk.bf16.vlgmr.msra.gmra.mrb[4].mxu0 %vm300_vm0, %v310_v11  ;;  %v312_v12 = vpop.permute.xlu1 %311 }
  0x8f   : > { %1080 = vmatpush3.bf16.xpose.msra.mxu1 %v472_v10  ;;  %1081 = vmatprep.mubr.msk.bf16.mxu1 %vm1192_vm1, %v1191_v0 }
  0x90   : > { %1087 = vmatprep.mubr.msk.bf16.mxu0 %vm1192_vm1, %v1191_v0  ;;  %1091 = vmatprep.subr.bf16.mxu1 %v1191_v0 }
  0x91   : > { %1086 = vmatpush3.bf16.msra.mxu0 %v645_v40 }
  0x92   : > { %1097 = vmatprep.subr.bf16.mxu0 %v1191_v0 }
  0x96   : > { %1082 = vmatmul.mubr.msk.bf16.vlgmr.msra.gmra.mrb[4].mxu1 %vm300_vm0, %v312_v12 }
  0x97   : > { %1093 = vmatprep.mubr.msk.bf16.mxu1 %vm1192_vm1, %v1191_v0 }
  0xee   : > { %v370_v14 = vpop.f32.mrb[0].mxu0 }
  0xef   : > { %v519_v15 = vsel %vm518_vm2, %v370_v14, -inf  ;;  %v1065_v16 = vpop.f32.mrb[1].mxu0 }
  0xf0   : > { %520 = vmax.xlane.f32.xlu0 %v519_v15  ;;  %v373_v17 = vpop.f32.mrb[2].mxu0 }
  0xf1   : > { %v1066_v18 = vpop.f32.mrb[3].mxu0 }
 0x161   : > { %v1302_v20 = vpop.f32.mrb[0].mxu1  ;;  %v1304_v21 = vpop.f32.mrb[4].mxu0 }
 0x162   : > { %v1071_v22 = vpop.f32.mrb[1].mxu1  ;;  %v522_v23 = vsel %vm518_vm2, %v1302_v20, -inf  ;;  %v525_v24 = vsel %vm518_vm2, %v1304_v21, -inf  ;;  %v1077_v25 = vpop.f32.mrb[5].mxu0 }
 0x163   : > { %523 = vmax.xlane.f32.xlu1 %v522_v23  ;;  %v419_v26 = vpop.f32.mrb[2].mxu1  ;;  %526 = vmax.xlane.f32.xlu0 %v525_v24  ;;  %v465_v27 = vpop.f32.mrb[6].mxu0 }
 0x164   : > { %v1072_v28 = vpop.f32.mrb[3].mxu1  ;;  %v1078_v29 = vpop.f32.mrb[7].mxu0  ;;  %v579_v27 = vld [vmem:[#allocation3] sm:$0xff] }
 0x169   : > { %v508_v30 = vpop.f32.mrb[4].mxu1 }
 0x16a   : > { %v1083_v31 = vpop.f32.mrb[5].mxu1  ;;  %v528_v32 = vsel %vm518_vm2, %v508_v30, -inf }
 0x16b   : > { %v511_v33 = vpop.f32.mrb[6].mxu1  ;;  %529 = vmax.xlane.f32.xlu0 %v528_v32 }
 0x16c   : > { %v1084_v34 = vpop.f32.mrb[7].mxu1 }
 0x17d   : > { %v521_v36 = vpop.xlane.xlu0 %520 }
 0x17e   : > { %v1314_v37 = vmax.f32 %v1311_v35, %v521_v36 }
 0x180   : > { %v535_v38 = vsub.f32 %v1311_v35, %v1314_v37  ;;  %833 = vst.msk [vmem:[#allocation2] sm:$0xff] %vm291_vm3, %v1314_v37  ;;  %549 = vperm.xlu1 %1141, %v1314_v37   ;;  %v581_v37 = vld [vmem:[#allocation3 + $0x10] sm:$0xff] }
 0x1f0   : > { %v524_v43 = vpop.xlane.xlu1 %523  ;;  %v527_v44 = vpop.xlane.xlu0 %526 }
 0x1f1   : > { %v1332_v45 = vmax.f32 %v1327_v41, %v524_v43  ;;  %v1335_v46 = vmax.f32 %v1329_v42, %v527_v44 }
 0x1f3   : > { %v536_v47 = vsub.f32 %v1327_v41, %v1332_v45  ;;  %834 = vst.msk [vmem:[#allocation2 + $0x8] sm:$0xff] %vm291_vm3, %v1332_v45  ;;  %v537_v48 = vsub.f32 %v1329_v42, %v1335_v46  ;;  %835 = vst.msk [vmem:[#allocation2 + $0x10] sm:$0xff] %vm291_vm3, %v1335_v46  ;;  %554 = vperm.xlu0 %1142, %v1332_v45   ;;  %559 = vperm.xlu1 %1141, %v1335_v46   ;;  %v582_v45 = vld [vmem:[#allocation3 + $0x18] sm:$0xff] }
 0x1f8   : > { %v530_v50 = vpop.xlane.xlu0 %529 }
 0x1f9   : > { %v534_v51 = vmax.f32 %v517_v49, %v530_v50 }
 0x1fb   : > { %v538_v52 = vsub.f32 %v517_v49, %v534_v51  ;;  %836 = vst.msk [vmem:[#allocation2 + $0x18] sm:$0xff] %vm291_vm3, %v534_v51  ;;  %564 = vperm.xlu1 %1141, %v534_v51  }
 0x1fd   : > { %v545_v22 = vmul.f32 1.442695, %v538_v52 }
 0x1ff   : > { %v550_v53 = vpop.permute.xlu1 %549  ;;  %323 = vrot.lane.b32.xlu1 %v1033_v39, %s1194_s24 }
 0x200   : > { %v567_v54 = vsub.f32 %v370_v14, %v550_v53 }
 0x202   : > { %v571_v55 = vmul.f32 1.442695, %v567_v54 }
 0x203   : > { %325 = vrot.lane.b32.xlu1 %v1033_v39, %s1193_s23 }
 0x204   : > { %1143 = vpow2.f32 %v571_v55 }
 0x207   : > { %327 = vrot.lane.b32.xlu1 %v1033_v39, %s1195_s25 }
 0x20e   : > { %v1144_v56 = vpop.eup %1143 }
 0x20f   : > { %v636_v57 = vpack.c.bf16 %v1144_v56, %v1144_v56  ;;  %v587_v58 = vsel %vm518_vm2, %v1144_v56, 0.0 }
 0x211   : > { %1088 = vmatmul.mubr.msk.bf16.vlgmr.msra.gmra.mrb[8].mxu0 %vm518_vm2, %v636_v57 }
 0x212   : > { %1099 = vmatprep.mubr.msk.bf16.mxu0 %vm1192_vm1, %v1191_v0 }
 0x22b   : > { %588 = vadd.xlane.f32.xlu1 %v587_v58 }
 0x272   : > { %v560_v59 = vpop.permute.xlu1 %559  ;;  %v555_v60 = vpop.permute.xlu0 %554 }
 0x273   : > { %v569_v61 = vsub.f32 %v1304_v21, %v560_v59  ;;  %v568_v62 = vsub.f32 %v1302_v20, %v555_v60  ;;  %v539_v20 = vmul.f32 1.442695, %v535_v38  ;;  %v541_v21 = vmul.f32 1.442695, %v536_v47  ;;  %v580_v38 = vld [vmem:[#allocation3 + $0x8] sm:$0xff]  ;;  %v608_v47 = vld [vmem:[#allocation4] sm:$0xff] }
 0x275   : > { %v575_v63 = vmul.f32 1.442695, %v569_v61  ;;  %v573_v1 = vmul.f32 1.442695, %v568_v62 }
 0x277   : > { %1145 = vpow2.f32 %v575_v63 }
 0x278   : > { %1147 = vpow2.f32 %v573_v1 }
 0x27a   : > { %v565_v2 = vpop.permute.xlu1 %564 }
 0x27b   : > { %v570_v3 = vsub.f32 %v508_v30, %v565_v2  ;;  %v609_v2 = vld [vmem:[#allocation4 + $0x8] sm:$0xff] }
 0x27d   : > { %v577_v4 = vmul.f32 1.442695, %v570_v3  ;;  %v610_v3 = vld [vmem:[#allocation4 + $0x10] sm:$0xff] }
 0x27e   : > { %v324_v5 = vpop.permute.xlu1 %323 }
 0x27f   : > { %1149 = vpow2.f32 %v577_v4  ;;  %v691_v6 = vsel %vm643_vm4, %v324_v5, 0 }
 0x280   : > { %1092 = vmatpush3.bf16.msra.mxu1 %v691_v6  ;;  %1151 = vpow2.f32 %v539_v20 }
 0x281   : > { %v1146_v7 = vpop.eup %1145  ;;  %1103 = vmatprep.subr.bf16.mxu1 %v1191_v0  ;;  %1153 = vpow2.f32 %v541_v21 }
 0x282   : > { %v1148_v8 = vpop.eup %1147  ;;  %v326_v9 = vpop.permute.xlu1 %325  ;;  %v593_v10 = vsel %vm518_vm2, %v1146_v7, 0.0  ;;  %v638_v14 = vpack.c.bf16 %v1146_v7, %v1146_v7  ;;  %1155 = vpow2.f32 %v545_v22 }
 0x283   : > { %v737_v11 = vsel %vm643_vm4, %v326_v9, 0  ;;  %594 = vadd.xlane.f32.xlu1 %v593_v10  ;;  %v590_v12 = vsel %vm518_vm2, %v1148_v8, 0.0  ;;  %v637_v13 = vpack.c.bf16 %v1148_v8, %v1148_v8 }
 0x284   : > { %591 = vadd.xlane.f32.xlu0 %v590_v12  ;;  %1098 = vmatpush3.bf16.msra.mxu0 %v737_v11 }
 0x285   : > { %1094 = vmatmul.mubr.msk.bf16.vlgmr.msra.gmra.mrb[8].mxu1 %vm518_vm2, %v637_v13 }
 0x286   : > { %v328_v15 = vpop.permute.xlu1 %327  ;;  %1105 = vmatprep.mubr.msk.bf16.mxu1 %vm1192_vm1, %v1191_v0  ;;  %v543_v0 = vmul.f32 1.442695, %v537_v48 }
 0x287   : > { %1100 = vmatmul.mubr.msk.bf16.vlgmr.msra.gmra.mrb[12].mxu0 %vm518_vm2, %v638_v14  ;;  %v783_v16 = vsel %vm643_vm4, %v328_v15, 0  ;;  %v611_v14 = vld [vmem:[#allocation4 + $0x18] sm:$0xff] }
 0x288   : > { %1104 = vmatpush3.bf16.msra.mxu1 %v783_v16  ;;  %1157 = vpow2.f32 %v543_v0 }
 0x289   : > { %v1150_v17 = vpop.eup %1149 }
 0x28a   : > { %v596_v18 = vsel %vm518_vm2, %v1150_v17, 0.0  ;;  %v639_v19 = vpack.c.bf16 %v1150_v17, %v1150_v17  ;;  %v1152_v23 = vpop.eup %1151 }
 0x28b   : > { %597 = vadd.xlane.f32.xlu1 %v596_v18  ;;  %v1154_v24 = vpop.eup %1153  ;;  %v583_v28 = vmul.f32 %v1152_v23, %v579_v27 }
 0x28c   : > { %v1156_v25 = vpop.eup %1155  ;;  %v584_v41 = vmul.f32 %v1154_v24, %v580_v38 }
 0x28d   : > { %1106 = vmatmul.mubr.msk.bf16.vlgmr.msra.gmra.mrb[12].mxu1 %vm518_vm2, %v639_v19  ;;  %v586_v46 = vmul.f32 %v1156_v25, %v582_v45 }
 0x292   : > { %v1158_v26 = vpop.eup %1157 }
 0x293   : > { %v585_v39 = vmul.f32 %v1158_v26, %v581_v37 }
 0x29a   : > { %614 = vperm.xlu0 %1142, %v1152_v23  }
 0x29c   : > { %619 = vperm.xlu1 %1141, %v1154_v24  }
 0x29e   : > { %629 = vperm.xlu0 %1142, %v1156_v25  }
 0x2a0   : > { %624 = vperm.xlu1 %1141, %v1158_v26  }
 0x2b8   : > { %v589_v29 = vpop.xlane.xlu1 %588 }
 0x2b9   : > { %v599_v30 = vadd.f32 %v589_v29, %v583_v28 }
 0x2bb   : > { %604 = vst.msk [vmem:[#allocation3] sm:$0xff] %vm291_vm3, %v599_v30 }
 0x2c2   : > { %v840_v31 = vld [vmem:[#allocation3] sm:$0xff] }
 0x2c3   : > { %1159 = vrcp.f32 %v840_v31 }
 0x2cd   : > { %v1160_v32 = vpop.eup %1159 }
 0x2ce   : > { %854 = vperm.xlu1 %1141, %v1160_v32  }
 0x2e4   : > { %v681_v33 = vpop.f32.mrb[8].mxu0 }
 0x2e5   : > { %v1089_v34 = vpop.f32.mrb[9].mxu0 }
 0x2e6   : > { %v684_v35 = vpop.f32.mrb[10].mxu0 }
 0x2e7   : > { %v1090_v36 = vpop.f32.mrb[11].mxu0 }
 0x310   : > { %v595_v40 = vpop.xlane.xlu1 %594 }
 0x311   : > { %v601_v42 = vadd.f32 %v595_v40, %v585_v39  ;;  %v592_v43 = vpop.xlane.xlu0 %591 }
 0x312   : > { %v600_v44 = vadd.f32 %v592_v43, %v584_v41 }
 0x313   : > { %606 = vst.msk [vmem:[#allocation3 + $0x10] sm:$0xff] %vm291_vm3, %v601_v42 }
 0x314   : > { %605 = vst.msk [vmem:[#allocation3 + $0x8] sm:$0xff] %vm291_vm3, %v600_v44 }
 0x318   : > { %v598_v48 = vpop.xlane.xlu1 %597 }
 0x319   : > { %v602_v49 = vadd.f32 %v598_v48, %v586_v46  ;;  %v615_v50 = vpop.permute.xlu0 %614 }
 0x31a   : > { %v632_v51 = vmul.f32 %v615_v50, %v608_v47  ;;  %v842_v52 = vld [vmem:[#allocation3 + $0x10] sm:$0xff] }
 0x31b   : > { %607 = vst.msk [vmem:[#allocation3 + $0x18] sm:$0xff] %vm291_vm3, %v602_v49  ;;  %1161 = vrcp.f32 %v842_v52  ;;  %v841_v53 = vld [vmem:[#allocation3 + $0x8] sm:$0xff] }
 0x31c   : > { %v825_v54 = vadd.f32 %v681_v33, %v632_v51  ;;  %1163 = vrcp.f32 %v841_v53  ;;  %v620_v59 = vpop.permute.xlu1 %619 }
 0x31d   : > { %v633_v4 = vmul.f32 %v620_v59, %v609_v2  ;;  %v630_v15 = vpop.permute.xlu0 %629 }
 0x31e   : > { %829 = vst.msk [vmem:[#allocation4] sm:$0xff] %vm300_vm0, %v825_v54  ;;  %v635_v18 = vmul.f32 %v630_v15, %v611_v14 }
 0x320   : > { %v625_v60 = vpop.permute.xlu1 %624 }
 0x321   : > { %v634_v6 = vmul.f32 %v625_v60, %v610_v3 }
 0x322   : > { %v843_v55 = vld [vmem:[#allocation3 + $0x18] sm:$0xff] }
 0x323   : > { %1165 = vrcp.f32 %v843_v55 }
 0x325   : > { %v1162_v56 = vpop.eup %1161  ;;  %v848_v62 = vld [vmem:[#allocation4] sm:$0xff] }
 0x326   : > { %v1164_v57 = vpop.eup %1163  ;;  %864 = vperm.xlu1 %1141, %v1162_v56  }
 0x327   : > { %859 = vperm.xlu0 %1142, %v1164_v57  }
 0x32d   : > { %v1166_v58 = vpop.eup %1165 }
 0x32e   : > { %869 = vperm.xlu0 %1142, %v1166_v58  }
 0x34d   : > { %v855_v61 = vpop.permute.xlu1 %854 }
 0x34e   : > { %v872_v63 = vmul.f32 %v855_v61, %v848_v62 }
 0x350   : > { %v876_v1 = vpack.c.bf16 %v872_v63, %v872_v63 }
 0x352   : > { %881 = vst.msk [vmem:[%s1384_s5] sm:$0xf] %vm880_vm5, %v876_v1 }
 0x358   : > { %v727_v5 = vpop.f32.mrb[8].mxu1 }
 0x359   : > { %v826_v7 = vadd.f32 %v727_v5, %v633_v4  ;;  %v1095_v8 = vpop.f32.mrb[9].mxu1 }
 0x35a   : > { %v730_v9 = vpop.f32.mrb[10].mxu1  ;;  %v773_v10 = vpop.f32.mrb[12].mxu0 }
 0x35b   : > { %830 = vst.msk [vmem:[#allocation4 + $0x8] sm:$0xff] %vm300_vm0, %v826_v7  ;;  %v1096_v11 = vpop.f32.mrb[11].mxu1  ;;  %v827_v12 = vadd.f32 %v773_v10, %v634_v6  ;;  %v1101_v13 = vpop.f32.mrb[13].mxu0 }
 0x35c   : > { %v776_v16 = vpop.f32.mrb[14].mxu0 }
 0x35d   : > { %831 = vst.msk [vmem:[#allocation4 + $0x10] sm:$0xff] %vm300_vm0, %v827_v12  ;;  %v1102_v17 = vpop.f32.mrb[15].mxu0 }
 0x360   : > { %v819_v19 = vpop.f32.mrb[12].mxu1 }
 0x361   : > { %v828_v20 = vadd.f32 %v819_v19, %v635_v18  ;;  %v1107_v21 = vpop.f32.mrb[13].mxu1 }
 0x362   : > { %v822_v22 = vpop.f32.mrb[14].mxu1  ;;  %v849_v26 = vld [vmem:[#allocation4 + $0x8] sm:$0xff] }
 0x363   : > { %832 = vst.msk [vmem:[#allocation4 + $0x18] sm:$0xff] %vm300_vm0, %v828_v20  ;;  %v1108_v0 = vpop.f32.mrb[15].mxu1 }
 0x364   : > { %v850_v24 = vld [vmem:[#allocation4 + $0x10] sm:$0xff] }
 0x36a   : > { %v851_v31 = vld [vmem:[#allocation4 + $0x18] sm:$0xff] }
 0x3a5   : > { %v865_v23 = vpop.permute.xlu1 %864 }
 0x3a6   : > { %v874_v25 = vmul.f32 %v865_v23, %v850_v24  ;;  %v860_v27 = vpop.permute.xlu0 %859 }
 0x3a7   : > { %v873_v28 = vmul.f32 %v860_v27, %v849_v26 }
 0x3a8   : > { %v878_v29 = vpack.c.bf16 %v874_v25, %v874_v25 }
 0x3a9   : > { %v877_v30 = vpack.c.bf16 %v873_v28, %v873_v28 }
 0x3aa   : > { %883 = vst.msk [vmem:[%s1384_s5 + $0x8] sm:$0xf] %vm880_vm5, %v878_v29 }
 0x3ab   : > { %882 = vst.msk [vmem:[%s1384_s5 + $0x4] sm:$0xf] %vm880_vm5, %v877_v30 }
 0x3ad   : > { %v870_v32 = vpop.permute.xlu0 %869 }
 0x3ae   : > { %v875_v33 = vmul.f32 %v870_v32, %v851_v31 }
 0x3b0   : > { %v879_v34 = vpack.c.bf16 %v875_v33, %v875_v33 }
 0x3b2   : > { %884 = vst.msk [vmem:[%s1384_s5 + $0xc] sm:$0xf] %vm880_vm5, %v879_v34 }
 0x3b3 PF: > { %s13_s14 = sadd.s32 1, %s1189_s14   ;;  %s1410_s12 = smov %s1185_s13 }
 0x3b4   : > { %p10_p5 = scmp.ge.s32.totalorder %s13_s14, 4   ;;  %s1411_s13 = smov %s1413_s15 }
 0x3b6   :  { %12 = sbr.rel (!%p10_p5) target bundleno = 2 (0x2), region = 76 }

</bundles_post_ra>
